<compile_context>
chip_gen: v5e
topology: v5e:2x2
jax: 0.10.0
libtpu: 0.0.40
codegen_flags: <defaults>
</compile_context>

<pallas_src>
import functools

import jax
import jax.numpy as jnp
from jax.experimental import pallas as pl
from jax.experimental.pallas import tpu as pltpu

LANES = 512          # lane-dense minor dim (multiple of 128)
MAX_TILE_R = 1024    # 1024 x 512 f32 block = 2 MiB; in+out double-buffered = 8 MiB


def _tr_kernel(w_ref, t_ref, o_ref, *, degree, knots):
    """Fused truncated-power-basis + weighted-sum kernel.

    w_ref : SMEM (d,) float32          -- spline weights (scalar-prefetched)
    t_ref : VMEM (tile_r, LANES) f32   -- treatment values in [0, 1]
    o_ref : VMEM (tile_r, LANES) f32   -- per-sample scalar output
    """
    x = t_ref[...]
    num_of_basis = degree + 1 + len(knots)

    # Hoist SMEM scalar reads once; the basis loop is fully unrolled at trace time.
    w = [w_ref[k] for k in range(num_of_basis)]

    # k = 0 basis is the constant 1.
    acc = jnp.zeros_like(x) + w[0]

    # Polynomial terms: incremental powers (p *= x), no `x ** k` pow path.
    p = x
    for k in range(1, degree + 1):
        if k > 1:
            p = p * x
        acc = acc + w[k] * p

    # Hinge (truncated-power) terms: r = relu(x - knot), raised by multiplies.
    # (Only reached for degree >= 2; degree == 1 with knots is rejected in the
    #  wrapper because the reference indexing is out of bounds there.)
    for j, knot in enumerate(knots):
        k = degree + 1 + j
        r = jnp.maximum(x - knot, 0.0)
        h = r
        for _ in range(degree - 1):
            h = h * r
        acc = acc + w[k] * h

    o_ref[...] = acc


def tr_forward(t, weight, *, degree, knots):
    """JAX/Pallas equivalent of TR.forward.

    t      : (B,) or (B, 1) float32
    weight : (d,) float32 with d = degree + 1 + len(knots)
    returns: (B,) float32
    """
    if not isinstance(degree, int) or degree == 0:
        raise ValueError("Degree should be a nonzero int (Truncated_power contract).")
    if degree == 1 and len(knots) > 0:
        # The torch reference indexes knots[k - degree], which goes out of bounds
        # for the last knot when degree == 1; fail early with a clear message
        # instead of reproducing that IndexError at trace time.
        raise ValueError(
            "degree == 1 with non-empty knots is ill-defined in the reference "
            "Truncated_power.forward")

    t = jnp.asarray(t, jnp.float32).reshape(-1)       # torch: x.squeeze()
    weight = jnp.asarray(weight, jnp.float32)
    b = t.shape[0]

    # Lane/sublane-dense layout: view the 1-D batch as (rows, LANES).
    rows = -(-b // LANES)                             # cdiv
    padded = rows * LANES
    if padded == b:
        t2d = t.reshape(rows, LANES)                  # fast path: no pad / slice copies
    else:
        t2d = jnp.pad(t, (0, padded - b)).reshape(rows, LANES)

    # Row-tile selection:
    #  * large batches: MAX_TILE_R rows/block; ragged last block masked by Pallas
    #  * mid batches  : split into >= 2 roughly equal blocks so v7x's two TCs
    #                   both stream HBM (harmless on single-TC v5e / v6e)
    #  * tiny batches : one full-extent block
    if rows >= 2 * MAX_TILE_R:
        tile_r = MAX_TILE_R
    elif rows >= 16:
        tile_r = min(MAX_TILE_R, ((-(-rows // 2) + 7) // 8) * 8)
    else:
        tile_r = rows
    grid = (pl.cdiv(rows, tile_r),)

    num_of_basis = degree + 1 + len(knots)
    flops_per_elem = 3 * degree + (degree + 3) * len(knots) + 1
    cost = pl.CostEstimate(
        flops=flops_per_elem * padded,
        transcendentals=0,
        bytes_accessed=2 * 4 * padded + 4 * num_of_basis,   # read t + write out + weights
    )

    kernel = functools.partial(_tr_kernel, degree=degree, knots=tuple(knots))
    out2d = pl.pallas_call(
        kernel,
        out_shape=jax.ShapeDtypeStruct((rows, LANES), jnp.float32),
        grid_spec=pltpu.PrefetchScalarGridSpec(
            num_scalar_prefetch=1,                       # weight -> SMEM once, before grid
            grid=grid,
            in_specs=[pl.BlockSpec((tile_r, LANES), lambda i, w: (i, 0))],
            out_specs=pl.BlockSpec((tile_r, LANES), lambda i, w: (i, 0)),
        ),
        compiler_params=pltpu.CompilerParams(
            dimension_semantics=("parallel",)),
        cost_estimate=cost,
    )(weight, t2d)

    flat = out2d.reshape(-1)
    return flat if padded == b else flat[:b]


def tr_reference(t, weight, *, degree, knots):
    """Pure-JAX reference mirroring Truncated_power.forward + matmul."""
    x = jnp.asarray(t, jnp.float32).reshape(-1)
    d = degree + 1 + len(knots)
    cols = []
    for k in range(d):
        if k <= degree:
            cols.append(jnp.ones_like(x) if k == 0 else x ** k)
        elif degree == 1:
            cols.append(jnp.maximum(x - knots[k - degree], 0.0))
        else:
            cols.append(jnp.maximum(x - knots[k - degree - 1], 0.0) ** degree)
    basis = jnp.stack(cols, axis=1)                   # (B, d)
    return basis @ jnp.asarray(weight, jnp.float32)   # (B,)


if __name__ == "__main__":
    # Module config (degree >= 2 keeps the reference knot indexing well-defined).
    degree = 2
    knots = [0.33, 0.66]
    d = degree + 1 + len(knots)

    key = jax.random.PRNGKey(0)
    k_w, k_t, k_t2, k_t3 = jax.random.split(key, 4)
    # torch.rand(d) equivalent: uniform [0, 1)
    weight = jax.random.uniform(k_w, (d,), dtype=jnp.float32)

    # Tiny (batch, 1) input -> single full-extent block.
    t_small = jax.random.uniform(k_t, (8, 1), dtype=jnp.float32)
    out_small = jax.block_until_ready(
        tr_forward(t_small, weight, degree=degree, knots=knots))
    ref_small = tr_reference(t_small, weight, degree=degree, knots=knots)
    assert out_small.shape == (8,)
    assert jnp.allclose(out_small, ref_small, atol=1e-5, rtol=1e-5), (out_small, ref_small)

    # batch % LANES == 0 fast path (no pad / no slice), 2 parallel blocks (v7x split).
    t_mid = jax.random.uniform(k_t2, (8192, 1), dtype=jnp.float32)
    out_mid = jax.block_until_ready(
        tr_forward(t_mid, weight, degree=degree, knots=knots))
    ref_mid = tr_reference(t_mid, weight, degree=degree, knots=knots)
    assert out_mid.shape == (8192,)
    assert jnp.allclose(out_mid, ref_mid, atol=1e-5, rtol=1e-5)

    # Non-multiple batch: minimal padding + ragged last grid block (masked writeback).
    t_big = jax.random.uniform(k_t3, (20000, 1), dtype=jnp.float32)
    out_big = jax.block_until_ready(
        tr_forward(t_big, weight, degree=degree, knots=knots))
    ref_big = tr_reference(t_big, weight, degree=degree, knots=knots)
    assert out_big.shape == (20000,)
    assert jnp.allclose(out_big, ref_big, atol=1e-5, rtol=1e-5)

    print("KERNEL_OK")
</pallas_src>

<mosaic_0001>
module attributes {stable_mosaic.version = 11 : i64} {
  func.func @_tr_kernel(%arg0: i32, %arg1: memref<5xf32, #tpu.memory_space<smem>>, %arg2: memref<1x512xf32, #tpu.memory_space<vmem>>, %arg3: memref<1x512xf32, #tpu.memory_space<vmem>>) attributes {dimension_semantics = [#tpu.dimension_semantics<parallel>], iteration_bounds = array<i64: 1>, scalar_prefetch = 1 : i64, scratch_operands = 0 : i64, tpu.core_type = #tpu.core_type<tc>, window_params = [{transform_indices = @transform_0, window_bounds = array<i64: 1, 512>}, {transform_indices = @transform_1, window_bounds = array<i64: 1, 512>}]} {
    %c0 = arith.constant 0 : index
    %c0_0 = arith.constant 0 : index
    %0 = vector.load %arg2[%c0, %c0_0] : memref<1x512xf32, #tpu.memory_space<vmem>>, vector<1x512xf32>
    %c0_1 = arith.constant 0 : index
    %1 = memref.load %arg1[%c0_1] : memref<5xf32, #tpu.memory_space<smem>>
    %c1 = arith.constant 1 : index
    %2 = memref.load %arg1[%c1] : memref<5xf32, #tpu.memory_space<smem>>
    %c2 = arith.constant 2 : index
    %3 = memref.load %arg1[%c2] : memref<5xf32, #tpu.memory_space<smem>>
    %c3 = arith.constant 3 : index
    %4 = memref.load %arg1[%c3] : memref<5xf32, #tpu.memory_space<smem>>
    %c4 = arith.constant 4 : index
    %5 = memref.load %arg1[%c4] : memref<5xf32, #tpu.memory_space<smem>>
    %cst = arith.constant 0.000000e+00 : f32
    %6 = vector.broadcast %cst : f32 to vector<1x512xf32>
    %7 = vector.broadcast %1 : f32 to vector<1x512xf32>
    %8 = arith.addf %6, %7 : vector<1x512xf32>
    %9 = vector.broadcast %2 : f32 to vector<1x512xf32>
    %10 = arith.mulf %9, %0 : vector<1x512xf32>
    %11 = arith.addf %8, %10 : vector<1x512xf32>
    %12 = arith.mulf %0, %0 : vector<1x512xf32>
    %13 = vector.broadcast %3 : f32 to vector<1x512xf32>
    %14 = arith.mulf %13, %12 : vector<1x512xf32>
    %15 = arith.addf %11, %14 : vector<1x512xf32>
    %cst_2 = arith.constant 3.300000e-01 : f32
    %16 = vector.broadcast %cst_2 : f32 to vector<1x512xf32>
    %17 = arith.subf %0, %16 : vector<1x512xf32>
    %cst_3 = arith.constant 0.000000e+00 : f32
    %18 = vector.broadcast %cst_3 : f32 to vector<1x512xf32>
    %19 = arith.maximumf %17, %18 : vector<1x512xf32>
    %20 = arith.mulf %19, %19 : vector<1x512xf32>
    %21 = vector.broadcast %4 : f32 to vector<1x512xf32>
    %22 = arith.mulf %21, %20 : vector<1x512xf32>
    %23 = arith.addf %15, %22 : vector<1x512xf32>
    %cst_4 = arith.constant 6.600000e-01 : f32
    %24 = vector.broadcast %cst_4 : f32 to vector<1x512xf32>
    %25 = arith.subf %0, %24 : vector<1x512xf32>
    %cst_5 = arith.constant 0.000000e+00 : f32
    %26 = vector.broadcast %cst_5 : f32 to vector<1x512xf32>
    %27 = arith.maximumf %25, %26 : vector<1x512xf32>
    %28 = arith.mulf %27, %27 : vector<1x512xf32>
    %29 = vector.broadcast %5 : f32 to vector<1x512xf32>
    %30 = arith.mulf %29, %28 : vector<1x512xf32>
    %31 = arith.addf %23, %30 : vector<1x512xf32>
    %c0_6 = arith.constant 0 : index
    %c0_7 = arith.constant 0 : index
    %32 = vector.load %arg3[%c0_6, %c0_7] : memref<1x512xf32, #tpu.memory_space<vmem>>, vector<1x512xf32>
    tpu.vector_store %arg3[%c0_6, %c0_7], %31 {strides = array<i32>} : memref<1x512xf32, #tpu.memory_space<vmem>>, vector<1x512xf32>,
    return
  }
  func.func @transform_0(%arg0: i32, %arg1: memref<5xf32, #tpu.memory_space<smem>>) -> (i32, i32) {
    %c0_i32 = arith.constant 0 : i32
    %c0_i32_0 = arith.constant 0 : i32
    return %arg0, %c0_i32 : i32, i32
  }
  func.func @transform_1(%arg0: i32, %arg1: memref<5xf32, #tpu.memory_space<smem>>) -> (i32, i32) {
    %c0_i32 = arith.constant 0 : i32
    %c0_i32_0 = arith.constant 0 : i32
    return %arg0, %c0_i32 : i32, i32
  }
}

</mosaic_0001>

<bundles_post_ra>
// kernel: tpu_custom_call.1
= control target key start
LH: loop header
LB: loop body
LE: loop exit
PB: predicated region body
PF: predicated region fallthrough
CT: control target
= control target key end

     0   :  { %s156_s12 = smov [#allocation3]   ;;  %s183_s0 = inlined_call_operand.hbm [shape: f32[5], index: 0, kind: input, shape index: {}]   ;;  %s184_s1 = inlined_call_operand.hbm [shape: f32[1,512], index: 1, kind: input, shape index: {}]   ;;  %s185_s2 = inlined_call_operand.hbm [shape: f32[1,512], index: 2, kind: output, shape index: {}]  }
   0x1   :  { %s8_s11 = sshll.u32 %s183_s0, 4  ;;  %s9_s11 = int_to_ptr.hbm [resolvable:$true] %s8_s11 }
   0x2   :  { %11 = dma.hbm_to_smem %s9_s11, 16, %s156_s12, [#allocation2] }
   0x3   :  { %150 = dma.done.wait [#allocation2], 16 }
   0x4   :  { %151 = vsyncadd [#allocation2], 4294967280 }
   0x5   :  { %14 = sfence }
   0x6   :  { %15 = vsyncpa [#allocation5], 0 }
   0x7   :  { %16 = vsyncpa [#allocation6], 0  ;;  %s22_s15 = sshll.u32 %s184_s1, 4  ;;  %s157_s16 = smov [#allocation4]   ;;  %s23_s15 = int_to_ptr.hbm [resolvable:$true] %s22_s15 }
   0x8   :  { %s24_s17 = sshll.u32 %s157_s16, 4  ;;  %s25_s17 = int_to_ptr.vmem [resolvable:$true] %s24_s17 }
   0x9   :  { %27 = dma.hbm_to_vmem [thread:$0]  %s23_s15, 64, %s25_s17, [#allocation5]  }
   0xa   :  { %152 = dma.done.wait [#allocation5], 64  }
   0xb   :  { %153 = vsyncadd [#allocation5], 4294967232  ;;  %s33_s0 = sld [smem:[#allocation3]]  ;;  %v32_v0 = vld [vmem:[#allocation4] sm:$0xf]  ;;  %v59_v17 = vlaneseq  ;;  %s158_s1 = smov [#allocation7]  }
   0xc   :  { %s81_s18 = sld [smem:[#allocation3 + $0x1]]  ;;  %v43_v3 = vmul.f32 %v32_v0, %v32_v0  ;;  %v85_v4 = vadd.f32 -0.33, %v32_v0  ;;  %v86_v5 = vadd.f32 -0.66, %v32_v0  ;;  %s69_s22 = sshll.u32 %s158_s1, 4  ;;  %s70_s22 = int_to_ptr.vmem [resolvable:$true] %s69_s22 }
   0xd   :  { %s82_s19 = sld [smem:[#allocation3 + $0x2]]  ;;  %s71_s25 = sshll.u32 %s185_s2, 4  ;;  %vm61_vm0 = vcmp.lt.s32.totalorder %v59_v17, 512  ;;  %s72_s25 = int_to_ptr.hbm [resolvable:$true] %s71_s25 }
   0xe   :  { %s83_s20 = sld [smem:[#allocation3 + $0x3]]  ;;  %v48_v9 = vmax.f32 %v85_v4, 0.0  ;;  %v54_v10 = vmax.f32 %v86_v5, 0.0 }
   0xf   :  { %s84_s21 = sld [smem:[#allocation3 + $0x4]] }
  0x10   :  { %v49_v14 = vmul.f32 %v48_v9, %v48_v9  ;;  %v55_v15 = vmul.f32 %v54_v10, %v54_v10 }
  0x11   :  { %v38_v1 = vstv %s33_s0 }
  0x12   :  { %v40_v2 = vstv %s81_s18 }
  0x13   :  { %v41_v6 = vmul.f32 %v40_v2, %v32_v0  ;;  %v44_v7 = vstv %s82_s19 }
  0x14   :  { %v45_v8 = vmul.f32 %v44_v7, %v43_v3  ;;  %v50_v12 = vstv %s83_s20 }
  0x15   :  { %v42_v11 = vadd.f32 %v41_v6, %v38_v1  ;;  %v56_v13 = vstv %s84_s21  ;;  %v51_v18 = vmul.f32 %v50_v12, %v49_v14 }
  0x16   :  { %v57_v19 = vmul.f32 %v56_v13, %v55_v15 }
  0x17   :  { %v46_v16 = vadd.f32 %v45_v8, %v42_v11 }
  0x19   :  { %v52_v20 = vadd.f32 %v51_v18, %v46_v16 }
  0x1b   :  { %v58_v21 = vadd.f32 %v57_v19, %v52_v20 }
  0x1d   :  { %63 = vst.msk [vmem:[#allocation7] sm:$0xf] %vm61_vm0, %v58_v21 }
  0x1e   :  { %74 = dma.vmem_to_hbm [thread:$0]  %s70_s22, 64, %s72_s25, [#allocation6]  }
  0x1f   :  { %154 = dma.done.wait [#allocation6], 64  }
  0x20   :  { %155 = vsyncadd [#allocation6], 4294967232 }
  0x21   :  { %79 = vsyncpa [#allocation5], 1 }
  0x22   :  { %80 = vsyncpa [#allocation6], 1 }

</bundles_post_ra>
